<compile_context>
chip_gen: v6e
topology: v6e:2x2x1
jax: 0.10.0
libtpu: 0.0.40
codegen_flags: <defaults>
</compile_context>

<pallas_src>
import functools

import jax
import jax.numpy as jnp
from jax.experimental import pallas as pl
from jax.experimental.pallas import tpu as pltpu

_LANE = 128     # TPU lane width (last-dim vreg tiling)
_SUBLANE = 8    # TPU sublane width (second-to-last-dim vreg tiling)
_TM_CAP = 512   # rows per batch tile: 512*2048*4 B = 4 MiB per buffer (x2 dbl-buf)


def _round_up(x, m):
    return (x + m - 1) // m * m


def _linear_dist_kernel(x_ref, w_ref, b_ref, at_ref, asq_ref, lin_ref, dist_ref):
    """One batch tile: linear layer + euclidean distances to anchors.

    x_ref:    (TM, F)   flattened input features
    w_ref:    (F, Cp)   linear weight, transposed and zero-padded to lane width
    b_ref:    (1, Cp)   linear bias, zero-padded
    at_ref:   (Cp, Cp)  anchors transposed:  at[d, m] = anchors[m, d]
    asq_ref:  (1, Cp)   per-anchor squared norms ||anchors[m]||^2
    lin_ref:  (TM, Cp)  outLinear (padded)
    dist_ref: (TM, Cp)  outDistance (padded)
    """
    lin = jnp.dot(x_ref[...], w_ref[...], preferred_element_type=jnp.float32)
    lin = lin + b_ref[...]
    lin_ref[...] = lin

    # ||lin - a||^2 = ||lin||^2 + ||a||^2 - 2 * lin . a   (cross term on the MXU)
    lin_sq = jnp.sum(lin * lin, axis=-1, keepdims=True)                    # (TM, 1)
    cross = jnp.dot(lin, at_ref[...], preferred_element_type=jnp.float32)  # (TM, Cp)
    d2 = lin_sq + asq_ref[...] - 2.0 * cross
    dist_ref[...] = jnp.sqrt(jnp.maximum(d2, 0.0))


def _linear_only_kernel(x_ref, w_ref, b_ref, lin_ref):
    """skip_distance=True path: just the linear layer."""
    lin = jnp.dot(x_ref[...], w_ref[...], preferred_element_type=jnp.float32)
    lin_ref[...] = lin + b_ref[...]


@functools.partial(jax.jit, static_argnames=("skip_distance",))
def open_set_forward(x, w_t, b, anchors, skip_distance=False):
    """Pallas forward of openSetClassifier.

    x:       (B, C_in, H, W) NCHW feature map (flattened internally like torch .view)
    w_t:     (F, C) linear weight transposed
    b:       (1, C) linear bias
    anchors: (C, C) anchor matrix
    """
    batch = x.shape[0]
    x_flat = x.reshape(batch, -1)
    if x_flat.dtype != jnp.float32:
        x_flat = x_flat.astype(jnp.float32)
    features = x_flat.shape[1]
    num_classes = anchors.shape[0]

    # Pad the class dim to a full lane (lane-dense output stores) and the batch
    # dim to a whole number of tiles.  All padding is zeros, so the un-padded
    # slice of the result is exact.
    c_pad = _round_up(num_classes, _LANE)
    tm = min(_TM_CAP, _round_up(batch, _SUBLANE))
    b_pad = _round_up(batch, tm)

    x_p = jnp.pad(x_flat, ((0, b_pad - batch), (0, 0)))
    w_p = jnp.pad(w_t.astype(jnp.float32), ((0, 0), (0, c_pad - num_classes)))
    b_p = jnp.pad(b.astype(jnp.float32).reshape(1, -1),
                  ((0, 0), (0, c_pad - num_classes)))

    grid = (b_pad // tm,)
    x_spec = pl.BlockSpec((tm, features), lambda i: (i, 0))
    w_spec = pl.BlockSpec((features, c_pad), lambda i: (0, 0))   # resident
    bias_spec = pl.BlockSpec((1, c_pad), lambda i: (0, 0))       # resident
    out_spec = pl.BlockSpec((tm, c_pad), lambda i: (i, 0))

    compiler_params = pltpu.CompilerParams(dimension_semantics=("parallel",))

    if skip_distance:
        cost = pl.CostEstimate(
            flops=2 * b_pad * features * c_pad,
            bytes_accessed=4 * (b_pad * features + features * c_pad
                                + c_pad + b_pad * c_pad),
            transcendentals=0,
        )
        lin_p = pl.pallas_call(
            _linear_only_kernel,
            out_shape=jax.ShapeDtypeStruct((b_pad, c_pad), jnp.float32),
            grid=grid,
            in_specs=[x_spec, w_spec, bias_spec],
            out_specs=out_spec,
            compiler_params=compiler_params,
            cost_estimate=cost,
        )(x_p, w_p, b_p)
        return lin_p[:batch, :num_classes], None

    a_p = jnp.pad(anchors.astype(jnp.float32),
                  ((0, c_pad - num_classes), (0, c_pad - num_classes)))
    a_t = a_p.T                                         # (d_pad, m_pad)
    a_sq = jnp.sum(a_p * a_p, axis=1).reshape(1, c_pad)  # ||anchor_m||^2

    cost = pl.CostEstimate(
        flops=2 * b_pad * features * c_pad + 2 * b_pad * c_pad * c_pad,
        bytes_accessed=4 * (b_pad * features + features * c_pad + c_pad * c_pad
                            + 2 * c_pad + 2 * b_pad * c_pad),
        transcendentals=0,
    )
    lin_p, dist_p = pl.pallas_call(
        _linear_dist_kernel,
        out_shape=(jax.ShapeDtypeStruct((b_pad, c_pad), jnp.float32),
                   jax.ShapeDtypeStruct((b_pad, c_pad), jnp.float32)),
        grid=grid,
        in_specs=[x_spec, w_spec, bias_spec,
                  pl.BlockSpec((c_pad, c_pad), lambda i: (0, 0)),  # anchors^T resident
                  pl.BlockSpec((1, c_pad), lambda i: (0, 0))],     # ||a||^2 resident
        out_specs=(out_spec, out_spec),
        compiler_params=compiler_params,
        cost_estimate=cost,
    )(x_p, w_p, b_p, a_t, a_sq)

    return lin_p[:batch, :num_classes], dist_p[:batch, :num_classes]


def reference_forward(x, w_t, b, anchors):
    """Pure-JAX reference mirroring the PyTorch module (f32)."""
    batch = x.shape[0]
    x_flat = x.reshape(batch, -1).astype(jnp.float32)
    lin = x_flat @ w_t + b
    diff = lin[:, None, :] - anchors[None, :, :]
    dist = jnp.sqrt(jnp.sum(diff * diff, axis=-1))
    return lin, dist


if __name__ == "__main__":
    # Module config: im_size=32 -> Linear(128*4*4, num_classes); num_classes=20.
    num_classes = 20
    feat_c, feat_h, feat_w = 128, 4, 4
    features = feat_c * feat_h * feat_w  # 2048
    batch = 2

    key = jax.random.PRNGKey(0)
    k_x, k_w, k_a = jax.random.split(key, 3)

    # Deterministic parameter init following _initialize_weights:
    #   Linear: weight ~ N(0, 0.01), bias = 0.
    w = jax.random.normal(k_w, (num_classes, features), dtype=jnp.float32) * 0.01
    w_t = w.T  # (F, C) glue transpose in plain JAX
    b = jnp.zeros((1, num_classes), dtype=jnp.float32)
    # Anchors are zeros in __init__ and set later via set_anchors(means);
    # use a deterministic non-trivial matrix here to exercise the distance path.
    anchors = jax.random.normal(k_a, (num_classes, num_classes), dtype=jnp.float32)

    # Input: NCHW feature map (B, 128, 4, 4), flattened inside like torch .view.
    x = jax.random.normal(k_x, (batch, feat_c, feat_h, feat_w), dtype=jnp.float32)

    out_lin, out_dist = open_set_forward(x, w_t, b, anchors)
    out_lin, out_dist = jax.block_until_ready((out_lin, out_dist))

    ref_lin, ref_dist = reference_forward(x, w_t, b, anchors)

    assert out_lin.shape == (batch, num_classes)
    assert out_dist.shape == (batch, num_classes)
    assert jnp.allclose(out_lin, ref_lin, atol=1e-4, rtol=1e-4)
    assert jnp.allclose(out_dist, ref_dist, atol=1e-3, rtol=1e-3)

    # Also exercise the skip_distance branch (separate, distance-free kernel).
    lin_only, none_dist = open_set_forward(x, w_t, b, anchors, skip_distance=True)
    lin_only = jax.block_until_ready(lin_only)
    assert none_dist is None
    assert jnp.allclose(lin_only, ref_lin, atol=1e-4, rtol=1e-4)

    print("KERNEL_OK")
</pallas_src>

<mosaic_0001>
module attributes {stable_mosaic.version = 11 : i64} {
  func.func @_linear_dist_kernel(%arg0: i32, %arg1: memref<8x2048xf32, #tpu.memory_space<vmem>>, %arg2: memref<2048x128xf32, #tpu.memory_space<vmem>>, %arg3: memref<1x128xf32, #tpu.memory_space<vmem>>, %arg4: memref<128x128xf32, #tpu.memory_space<vmem>>, %arg5: memref<1x128xf32, #tpu.memory_space<vmem>>, %arg6: memref<8x128xf32, #tpu.memory_space<vmem>>, %arg7: memref<8x128xf32, #tpu.memory_space<vmem>>) attributes {dimension_semantics = [#tpu.dimension_semantics<parallel>], iteration_bounds = array<i64: 1>, scalar_prefetch = 0 : i64, scratch_operands = 0 : i64, tpu.core_type = #tpu.core_type<tc>, window_params = [{transform_indices = @transform_0, window_bounds = array<i64: 8, 2048>}, {pipeline_mode = #tpu.pipeline_mode<synchronous>, transform_indices = @transform_1, window_bounds = array<i64: 2048, 128>}, {pipeline_mode = #tpu.pipeline_mode<synchronous>, transform_indices = @transform_2, window_bounds = array<i64: 1, 128>}, {pipeline_mode = #tpu.pipeline_mode<synchronous>, transform_indices = @transform_3, window_bounds = array<i64: 128, 128>}, {pipeline_mode = #tpu.pipeline_mode<synchronous>, transform_indices = @transform_4, window_bounds = array<i64: 1, 128>}, {transform_indices = @transform_5, window_bounds = array<i64: 8, 128>}, {transform_indices = @transform_6, window_bounds = array<i64: 8, 128>}]} {
    %c0 = arith.constant 0 : index
    %c0_0 = arith.constant 0 : index
    %0 = vector.load %arg1[%c0, %c0_0] : memref<8x2048xf32, #tpu.memory_space<vmem>>, vector<8x2048xf32>
    %c0_1 = arith.constant 0 : index
    %c0_2 = arith.constant 0 : index
    %1 = vector.load %arg2[%c0_1, %c0_2] : memref<2048x128xf32, #tpu.memory_space<vmem>>, vector<2048x128xf32>
    %cst = arith.constant dense<0.000000e+00> : vector<8x128xf32>
    %2 = tpu.matmul %0, %1, %cst {dimension_numbers = #tpu.dot_dimension_numbers<[1], [0], [0], [1], [0, 0, 1, 1], [], []>} : vector<8x2048xf32>, vector<2048x128xf32>, vector<8x128xf32> -> vector<8x128xf32>
    %c0_3 = arith.constant 0 : index
    %c0_4 = arith.constant 0 : index
    %3 = vector.load %arg3[%c0_3, %c0_4] : memref<1x128xf32, #tpu.memory_space<vmem>>, vector<1x128xf32>
    %4 = vector.broadcast %3 : vector<1x128xf32> to vector<8x128xf32>
    %5 = arith.addf %2, %4 : vector<8x128xf32>
    %c0_5 = arith.constant 0 : index
    %c0_6 = arith.constant 0 : index
    %6 = vector.load %arg6[%c0_5, %c0_6] : memref<8x128xf32, #tpu.memory_space<vmem>>, vector<8x128xf32>
    tpu.vector_store %arg6[%c0_5, %c0_6], %5 {strides = array<i32>} : memref<8x128xf32, #tpu.memory_space<vmem>>, vector<8x128xf32>,
    %7 = arith.mulf %5, %5 : vector<8x128xf32>
    %cst_7 = arith.constant dense<0.000000e+00> : vector<8xf32>
    %8 = vector.multi_reduction <add>, %7, %cst_7 [1] : vector<8x128xf32> to vector<8xf32>
    %9 = vector.shape_cast %8 : vector<8xf32> to vector<8x1xf32>
    %c0_8 = arith.constant 0 : index
    %c0_9 = arith.constant 0 : index
    %10 = vector.load %arg4[%c0_8, %c0_9] : memref<128x128xf32, #tpu.memory_space<vmem>>, vector<128x128xf32>
    %cst_10 = arith.constant dense<0.000000e+00> : vector<8x128xf32>
    %11 = tpu.matmul %5, %10, %cst_10 {dimension_numbers = #tpu.dot_dimension_numbers<[1], [0], [0], [1], [0, 0, 1, 1], [], []>} : vector<8x128xf32>, vector<128x128xf32>, vector<8x128xf32> -> vector<8x128xf32>
    %c0_11 = arith.constant 0 : index
    %c0_12 = arith.constant 0 : index
    %12 = vector.load %arg5[%c0_11, %c0_12] : memref<1x128xf32, #tpu.memory_space<vmem>>, vector<1x128xf32>
    %13 = vector.broadcast %9 : vector<8x1xf32> to vector<8x128xf32>
    %14 = vector.broadcast %12 : vector<1x128xf32> to vector<8x128xf32>
    %15 = arith.addf %13, %14 : vector<8x128xf32>
    %cst_13 = arith.constant 2.000000e+00 : f32
    %16 = vector.broadcast %cst_13 : f32 to vector<8x128xf32>
    %17 = arith.mulf %16, %11 : vector<8x128xf32>
    %18 = arith.subf %15, %17 : vector<8x128xf32>
    %cst_14 = arith.constant 0.000000e+00 : f32
    %19 = vector.broadcast %cst_14 : f32 to vector<8x128xf32>
    %20 = arith.maximumf %18, %19 : vector<8x128xf32>
    %21 = math.sqrt %20 : vector<8x128xf32>
    %c0_15 = arith.constant 0 : index
    %c0_16 = arith.constant 0 : index
    %22 = vector.load %arg7[%c0_15, %c0_16] : memref<8x128xf32, #tpu.memory_space<vmem>>, vector<8x128xf32>
    tpu.vector_store %arg7[%c0_15, %c0_16], %21 {strides = array<i32>} : memref<8x128xf32, #tpu.memory_space<vmem>>, vector<8x128xf32>,
    return
  }
  func.func @transform_0(%arg0: i32) -> (i32, i32) {
    %c0_i32 = arith.constant 0 : i32
    %c0_i32_0 = arith.constant 0 : i32
    return %arg0, %c0_i32 : i32, i32
  }
  func.func @transform_1(%arg0: i32) -> (i32, i32) {
    %c0_i32 = arith.constant 0 : i32
    %c0_i32_0 = arith.constant 0 : i32
    %c0_i32_1 = arith.constant 0 : i32
    return %c0_i32, %c0_i32_0 : i32, i32
  }
  func.func @transform_2(%arg0: i32) -> (i32, i32) {
    %c0_i32 = arith.constant 0 : i32
    %c0_i32_0 = arith.constant 0 : i32
    %c0_i32_1 = arith.constant 0 : i32
    return %c0_i32, %c0_i32_0 : i32, i32
  }
  func.func @transform_3(%arg0: i32) -> (i32, i32) {
    %c0_i32 = arith.constant 0 : i32
    %c0_i32_0 = arith.constant 0 : i32
    %c0_i32_1 = arith.constant 0 : i32
    return %c0_i32, %c0_i32_0 : i32, i32
  }
  func.func @transform_4(%arg0: i32) -> (i32, i32) {
    %c0_i32 = arith.constant 0 : i32
    %c0_i32_0 = arith.constant 0 : i32
    %c0_i32_1 = arith.constant 0 : i32
    return %c0_i32, %c0_i32_0 : i32, i32
  }
  func.func @transform_5(%arg0: i32) -> (i32, i32) {
    %c0_i32 = arith.constant 0 : i32
    %c0_i32_0 = arith.constant 0 : i32
    return %arg0, %c0_i32 : i32, i32
  }
  func.func @transform_6(%arg0: i32) -> (i32, i32) {
    %c0_i32 = arith.constant 0 : i32
    %c0_i32_0 = arith.constant 0 : i32
    return %arg0, %c0_i32 : i32, i32
  }
}

</mosaic_0001>

<bundles_post_ra>
// kernel: open_set_forward.1
= control target key start
LH: loop header
LB: loop body
LE: loop exit
PB: predicated region body
PF: predicated region fallthrough
CT: control target
= control target key end

     0   :  { %vm1317_vm0 = vmmov 0   ;;  %s2229_s1 = inlined_call_operand.vmem [shape: f32[2048,128], index: 1, kind: input, shape index: {}]   ;;  %s2230_s0 = inlined_call_operand.vmem [shape: f32[8,2048], index: 0, kind: input, shape index: {}]   ;;  %s2231_s3 = inlined_call_operand.vmem [shape: f32[128,128], index: 3, kind: input, shape index: {}]   ;;  %s2232_s2 = inlined_call_operand.vmem [shape: f32[1,128], index: 2, kind: input, shape index: {}]   ;;  %s2233_s5 = inlined_call_operand.vmem [shape: f32[8,128], index: 5, kind: output, shape index: {0}]   ;;  %s2234_s4 = inlined_call_operand.vmem [shape: f32[1,128], index: 4, kind: input, shape index: {}]   ;;  %s2235_s6 = inlined_call_operand.vmem [shape: f32[8,128], index: 6, kind: output, shape index: {1}]  }
   0x1   :  { %v69_v0 = vld [vmem:[%s2229_s1 + $0xf8] sm:$0xff]  ;;  %v68_v4 = vld [vmem:[%s2229_s1 + $0xf0] sm:$0xff]  ;;  %v67_v8 = vld [vmem:[%s2229_s1 + $0xe8] sm:$0xff] }
   0x2   :  { %v101_v1 = vld [vmem:[%s2229_s1 + $0x1f8] sm:$0xff]  ;;  %980 = vmatprep.subr.mxu0 %v69_v0  ;;  %v100_v5 = vld [vmem:[%s2229_s1 + $0x1f0] sm:$0xff]  ;;  %v99_v9 = vld [vmem:[%s2229_s1 + $0x1e8] sm:$0xff] }
   0x3   :  { %v53_v2 = vld [vmem:[%s2229_s1 + $0x78] sm:$0xff]  ;;  %1015 = vmatprep.subr.mxu1 %v101_v1  ;;  %v52_v6 = vld [vmem:[%s2229_s1 + $0x70] sm:$0xff]  ;;  %v51_v10 = vld [vmem:[%s2229_s1 + $0x68] sm:$0xff] }
   0x4   :  { %v85_v3 = vld [vmem:[%s2229_s1 + $0x178] sm:$0xff]  ;;  %981 = vmatpush3.msra.mxu0 %v53_v2  ;;  %v84_v7 = vld [vmem:[%s2229_s1 + $0x170] sm:$0xff]  ;;  %v83_v11 = vld [vmem:[%s2229_s1 + $0x168] sm:$0xff] }
   0x5   :  { %1016 = vmatpush3.msra.mxu1 %v85_v3  ;;  %982 = vmatprep.subr.mxu0 %v68_v4  ;;  %v66_v12 = vld [vmem:[%s2229_s1 + $0xe0] sm:$0xff]  ;;  %v65_v16 = vld [vmem:[%s2229_s1 + $0xd8] sm:$0xff]  ;;  %v64_v20 = vld [vmem:[%s2229_s1 + $0xd0] sm:$0xff] }
   0x6   :  { %1017 = vmatprep.subr.mxu1 %v100_v5  ;;  %983 = vmatpush3.msra.mxu0 %v52_v6  ;;  %v98_v13 = vld [vmem:[%s2229_s1 + $0x1e0] sm:$0xff]  ;;  %v97_v17 = vld [vmem:[%s2229_s1 + $0x1d8] sm:$0xff]  ;;  %v96_v21 = vld [vmem:[%s2229_s1 + $0x1d0] sm:$0xff] }
   0x7   :  { %1018 = vmatpush3.msra.mxu1 %v84_v7  ;;  %984 = vmatprep.subr.mxu0 %v67_v8  ;;  %v50_v14 = vld [vmem:[%s2229_s1 + $0x60] sm:$0xff]  ;;  %v49_v18 = vld [vmem:[%s2229_s1 + $0x58] sm:$0xff]  ;;  %v48_v22 = vld [vmem:[%s2229_s1 + $0x50] sm:$0xff] }
   0x8   :  { %1019 = vmatprep.subr.mxu1 %v99_v9  ;;  %v82_v15 = vld [vmem:[%s2229_s1 + $0x160] sm:$0xff]  ;;  %985 = vmatpush3.msra.mxu0 %v51_v10  ;;  %v81_v19 = vld [vmem:[%s2229_s1 + $0x158] sm:$0xff]  ;;  %v80_v23 = vld [vmem:[%s2229_s1 + $0x150] sm:$0xff] }
   0x9   :  { %1020 = vmatpush3.msra.mxu1 %v83_v11  ;;  %986 = vmatprep.subr.mxu0 %v66_v12  ;;  %v63_v24 = vld [vmem:[%s2229_s1 + $0xc8] sm:$0xff]  ;;  %v62_v28 = vld [vmem:[%s2229_s1 + $0xc0] sm:$0xff]  ;;  %v61_v32 = vld [vmem:[%s2229_s1 + $0xb8] sm:$0xff] }
   0xa   :  { %1021 = vmatprep.subr.mxu1 %v98_v13  ;;  %987 = vmatpush3.msra.mxu0 %v50_v14  ;;  %v95_v25 = vld [vmem:[%s2229_s1 + $0x1c8] sm:$0xff]  ;;  %v94_v29 = vld [vmem:[%s2229_s1 + $0x1c0] sm:$0xff]  ;;  %v93_v33 = vld [vmem:[%s2229_s1 + $0x1b8] sm:$0xff] }
   0xb   :  { %1022 = vmatpush3.msra.mxu1 %v82_v15  ;;  %988 = vmatprep.subr.mxu0 %v65_v16  ;;  %v47_v26 = vld [vmem:[%s2229_s1 + $0x48] sm:$0xff]  ;;  %v46_v30 = vld [vmem:[%s2229_s1 + $0x40] sm:$0xff]  ;;  %v45_v34 = vld [vmem:[%s2229_s1 + $0x38] sm:$0xff] }
   0xc   :  { %1023 = vmatprep.subr.mxu1 %v97_v17  ;;  %989 = vmatpush3.msra.mxu0 %v49_v18  ;;  %v79_v27 = vld [vmem:[%s2229_s1 + $0x148] sm:$0xff]  ;;  %v78_v31 = vld [vmem:[%s2229_s1 + $0x140] sm:$0xff]  ;;  %v77_v35 = vld [vmem:[%s2229_s1 + $0x138] sm:$0xff] }
   0xd   :  { %1024 = vmatpush3.msra.mxu1 %v81_v19  ;;  %990 = vmatprep.subr.mxu0 %v64_v20  ;;  %v60_v36 = vld [vmem:[%s2229_s1 + $0xb0] sm:$0xff]  ;;  %v59_v40 = vld [vmem:[%s2229_s1 + $0xa8] sm:$0xff]  ;;  %v58_v44 = vld [vmem:[%s2229_s1 + $0xa0] sm:$0xff] }
   0xe   :  { %1025 = vmatprep.subr.mxu1 %v96_v21  ;;  %991 = vmatpush3.msra.mxu0 %v48_v22  ;;  %v92_v37 = vld [vmem:[%s2229_s1 + $0x1b0] sm:$0xff]  ;;  %v91_v41 = vld [vmem:[%s2229_s1 + $0x1a8] sm:$0xff]  ;;  %v90_v45 = vld [vmem:[%s2229_s1 + $0x1a0] sm:$0xff] }
   0xf   :  { %1026 = vmatpush3.msra.mxu1 %v80_v23  ;;  %992 = vmatprep.subr.mxu0 %v63_v24  ;;  %v44_v38 = vld [vmem:[%s2229_s1 + $0x30] sm:$0xff]  ;;  %v43_v42 = vld [vmem:[%s2229_s1 + $0x28] sm:$0xff]  ;;  %v42_v46 = vld [vmem:[%s2229_s1 + $0x20] sm:$0xff] }
  0x10   :  { %1027 = vmatprep.subr.mxu1 %v95_v25  ;;  %993 = vmatpush3.msra.mxu0 %v47_v26  ;;  %v76_v39 = vld [vmem:[%s2229_s1 + $0x130] sm:$0xff]  ;;  %v75_v43 = vld [vmem:[%s2229_s1 + $0x128] sm:$0xff]  ;;  %v74_v47 = vld [vmem:[%s2229_s1 + $0x120] sm:$0xff] }
  0x11   :  { %1028 = vmatpush3.msra.mxu1 %v79_v27  ;;  %994 = vmatprep.subr.mxu0 %v62_v28  ;;  %v57_v48 = vld [vmem:[%s2229_s1 + $0x98] sm:$0xff]  ;;  %v56_v52 = vld [vmem:[%s2229_s1 + $0x90] sm:$0xff]  ;;  %v55_v56 = vld [vmem:[%s2229_s1 + $0x88] sm:$0xff] }
  0x12   :  { %1029 = vmatprep.subr.mxu1 %v94_v29  ;;  %995 = vmatpush3.msra.mxu0 %v46_v30  ;;  %v89_v49 = vld [vmem:[%s2229_s1 + $0x198] sm:$0xff]  ;;  %v88_v53 = vld [vmem:[%s2229_s1 + $0x190] sm:$0xff]  ;;  %v87_v57 = vld [vmem:[%s2229_s1 + $0x188] sm:$0xff] }
  0x13   :  { %1030 = vmatpush3.msra.mxu1 %v78_v31  ;;  %996 = vmatprep.subr.mxu0 %v61_v32  ;;  %v41_v50 = vld [vmem:[%s2229_s1 + $0x18] sm:$0xff]  ;;  %v40_v54 = vld [vmem:[%s2229_s1 + $0x10] sm:$0xff]  ;;  %v39_v58 = vld [vmem:[%s2229_s1 + $0x8] sm:$0xff] }
  0x14   :  { %1031 = vmatprep.subr.mxu1 %v93_v33  ;;  %997 = vmatpush3.msra.mxu0 %v45_v34  ;;  %v73_v51 = vld [vmem:[%s2229_s1 + $0x118] sm:$0xff]  ;;  %v72_v55 = vld [vmem:[%s2229_s1 + $0x110] sm:$0xff]  ;;  %v71_v59 = vld [vmem:[%s2229_s1 + $0x108] sm:$0xff] }
  0x15   :  { %1032 = vmatpush3.msra.mxu1 %v77_v35  ;;  %998 = vmatprep.subr.mxu0 %v60_v36  ;;  %v54_v60 = vld [vmem:[%s2229_s1 + $0x80] sm:$0xff]  ;;  %v23_v63 = vld [vmem:[%s2230_s0 + $0x8] sm:$0xff]  ;;  %v25_v2 = vld [vmem:[%s2230_s0 + $0x18] sm:$0xff] }
  0x16   :  { %1033 = vmatprep.subr.mxu1 %v92_v37  ;;  %999 = vmatpush3.msra.mxu0 %v44_v38  ;;  %v86_v61 = vld [vmem:[%s2229_s1 + $0x180] sm:$0xff]  ;;  %v133_v3 = vld [vmem:[%s2229_s1 + $0x2f8] sm:$0xff]  ;;  %v24_v5 = vld [vmem:[%s2230_s0 + $0x10] sm:$0xff] }
  0x17   :  { %1034 = vmatpush3.msra.mxu1 %v76_v39  ;;  %1000 = vmatprep.subr.mxu0 %v59_v40  ;;  %v38_v62 = vld [vmem:[%s2229_s1] sm:$0xff]  ;;  %v165_v4 = vld [vmem:[%s2229_s1 + $0x3f8] sm:$0xff]  ;;  %v132_v8 = vld [vmem:[%s2229_s1 + $0x2f0] sm:$0xff] }
  0x18   :  { %1035 = vmatprep.subr.mxu1 %v91_v41  ;;  %1001 = vmatpush3.msra.mxu0 %v43_v42  ;;  %v70_v0 = vld [vmem:[%s2229_s1 + $0x100] sm:$0xff]  ;;  %v117_v6 = vld [vmem:[%s2229_s1 + $0x278] sm:$0xff]  ;;  %v164_v9 = vld [vmem:[%s2229_s1 + $0x3f0] sm:$0xff] }
  0x19   :  { %1036 = vmatpush3.msra.mxu1 %v75_v43  ;;  %1002 = vmatprep.subr.mxu0 %v58_v44  ;;  %v22_v1 = vld [vmem:[%s2230_s0] sm:$0xff]  ;;  %v149_v7 = vld [vmem:[%s2229_s1 + $0x378] sm:$0xff]  ;;  %v116_v10 = vld [vmem:[%s2229_s1 + $0x270] sm:$0xff] }
  0x1a   :  { %1037 = vmatprep.subr.mxu1 %v90_v45  ;;  %1003 = vmatpush3.msra.mxu0 %v42_v46  ;;  %v148_v11 = vld [vmem:[%s2229_s1 + $0x370] sm:$0xff]  ;;  %v131_v12 = vld [vmem:[%s2229_s1 + $0x2e8] sm:$0xff]  ;;  %v130_v16 = vld [vmem:[%s2229_s1 + $0x2e0] sm:$0xff] }
  0x1b   :  { %1038 = vmatpush3.msra.mxu1 %v74_v47  ;;  %1004 = vmatprep.subr.mxu0 %v57_v48  ;;  %v163_v13 = vld [vmem:[%s2229_s1 + $0x3e8] sm:$0xff]  ;;  %v162_v17 = vld [vmem:[%s2229_s1 + $0x3e0] sm:$0xff]  ;;  %v129_v20 = vld [vmem:[%s2229_s1 + $0x2d8] sm:$0xff] }
  0x1c   :  { %1039 = vmatprep.subr.mxu1 %v89_v49  ;;  %1005 = vmatpush3.msra.mxu0 %v41_v50  ;;  %v115_v14 = vld [vmem:[%s2229_s1 + $0x268] sm:$0xff]  ;;  %v114_v18 = vld [vmem:[%s2229_s1 + $0x260] sm:$0xff]  ;;  %v161_v21 = vld [vmem:[%s2229_s1 + $0x3d8] sm:$0xff] }
  0x1d   :  { %1040 = vmatpush3.msra.mxu1 %v73_v51  ;;  %1006 = vmatprep.subr.mxu0 %v56_v52  ;;  %v147_v15 = vld [vmem:[%s2229_s1 + $0x368] sm:$0xff]  ;;  %v146_v19 = vld [vmem:[%s2229_s1 + $0x360] sm:$0xff]  ;;  %v113_v22 = vld [vmem:[%s2229_s1 + $0x258] sm:$0xff] }
  0x1e   :  { %1041 = vmatprep.subr.mxu1 %v88_v53  ;;  %1007 = vmatpush3.msra.mxu0 %v40_v54  ;;  %v145_v23 = vld [vmem:[%s2229_s1 + $0x358] sm:$0xff]  ;;  %v128_v24 = vld [vmem:[%s2229_s1 + $0x2d0] sm:$0xff]  ;;  %v127_v28 = vld [vmem:[%s2229_s1 + $0x2c8] sm:$0xff] }
  0x1f   :  { %1042 = vmatpush3.msra.mxu1 %v72_v55  ;;  %1008 = vmatprep.subr.mxu0 %v55_v56  ;;  %v160_v25 = vld [vmem:[%s2229_s1 + $0x3d0] sm:$0xff]  ;;  %v159_v29 = vld [vmem:[%s2229_s1 + $0x3c8] sm:$0xff]  ;;  %v126_v32 = vld [vmem:[%s2229_s1 + $0x2c0] sm:$0xff] }
  0x20   :  { %1043 = vmatprep.subr.mxu1 %v87_v57  ;;  %1009 = vmatpush3.msra.mxu0 %v39_v58  ;;  %v112_v26 = vld [vmem:[%s2229_s1 + $0x250] sm:$0xff]  ;;  %v111_v30 = vld [vmem:[%s2229_s1 + $0x248] sm:$0xff]  ;;  %v158_v33 = vld [vmem:[%s2229_s1 + $0x3c0] sm:$0xff] }
  0x21   :  { %1044 = vmatpush3.msra.mxu1 %v71_v59  ;;  %1010 = vmatprep.subr.mxu0 %v54_v60  ;;  %v144_v27 = vld [vmem:[%s2229_s1 + $0x350] sm:$0xff]  ;;  %v143_v31 = vld [vmem:[%s2229_s1 + $0x348] sm:$0xff]  ;;  %v110_v34 = vld [vmem:[%s2229_s1 + $0x240] sm:$0xff] }
  0x22   :  { %1045 = vmatprep.subr.mxu1 %v86_v61  ;;  %1011 = vmatpush3.msra.mxu0 %v38_v62  ;;  %v142_v35 = vld [vmem:[%s2229_s1 + $0x340] sm:$0xff]  ;;  %v125_v36 = vld [vmem:[%s2229_s1 + $0x2b8] sm:$0xff]  ;;  %v124_v40 = vld [vmem:[%s2229_s1 + $0x2b0] sm:$0xff] }
  0x23   :  { %365 = vmatprep.mubr.f32.mxu0 %v23_v63  ;;  %1046 = vmatpush3.msra.mxu1 %v70_v0  ;;  %v157_v37 = vld [vmem:[%s2229_s1 + $0x3b8] sm:$0xff]  ;;  %v156_v41 = vld [vmem:[%s2229_s1 + $0x3b0] sm:$0xff]  ;;  %v123_v44 = vld [vmem:[%s2229_s1 + $0x2a8] sm:$0xff] }
  0x24   :  { %366 = vmatmul.mubr.f32.vlgmr.msra.gmra.mxu0 %v22_v1  ;;  %435 = vmatprep.mubr.f32.mxu1 %v25_v2  ;;  %v109_v38 = vld [vmem:[%s2229_s1 + $0x238] sm:$0xff]  ;;  %v108_v42 = vld [vmem:[%s2229_s1 + $0x230] sm:$0xff]  ;;  %v155_v45 = vld [vmem:[%s2229_s1 + $0x3a8] sm:$0xff] }
  0x25   :  { %1050 = vmatprep.subr.mxu0 %v133_v3  ;;  %1085 = vmatprep.subr.mxu1 %v165_v4  ;;  %v141_v39 = vld [vmem:[%s2229_s1 + $0x338] sm:$0xff]  ;;  %v140_v43 = vld [vmem:[%s2229_s1 + $0x330] sm:$0xff]  ;;  %v107_v46 = vld [vmem:[%s2229_s1 + $0x228] sm:$0xff] }
  0x26   :  { %436 = vmatmul.mubr.f32.vlgmr.msra.gmra.mxu1 %v24_v5  ;;  %1051 = vmatpush3.msra.mxu0 %v117_v6  ;;  %v139_v47 = vld [vmem:[%s2229_s1 + $0x328] sm:$0xff]  ;;  %v122_v48 = vld [vmem:[%s2229_s1 + $0x2a0] sm:$0xff]  ;;  %v121_v52 = vld [vmem:[%s2229_s1 + $0x298] sm:$0xff] }
  0x27   :  { %1086 = vmatpush3.msra.mxu1 %v149_v7  ;;  %1052 = vmatprep.subr.mxu0 %v132_v8  ;;  %v154_v49 = vld [vmem:[%s2229_s1 + $0x3a0] sm:$0xff]  ;;  %v153_v53 = vld [vmem:[%s2229_s1 + $0x398] sm:$0xff]  ;;  %v120_v56 = vld [vmem:[%s2229_s1 + $0x290] sm:$0xff] }
  0x28   :  { %1087 = vmatprep.subr.mxu1 %v164_v9  ;;  %1053 = vmatpush3.msra.mxu0 %v116_v10  ;;  %v106_v50 = vld [vmem:[%s2229_s1 + $0x220] sm:$0xff]  ;;  %v105_v54 = vld [vmem:[%s2229_s1 + $0x218] sm:$0xff]  ;;  %v152_v57 = vld [vmem:[%s2229_s1 + $0x390] sm:$0xff] }
  0x29   :  { %1088 = vmatpush3.msra.mxu1 %v148_v11  ;;  %1054 = vmatprep.subr.mxu0 %v131_v12  ;;  %v138_v51 = vld [vmem:[%s2229_s1 + $0x320] sm:$0xff]  ;;  %v137_v55 = vld [vmem:[%s2229_s1 + $0x318] sm:$0xff]  ;;  %v104_v58 = vld [vmem:[%s2229_s1 + $0x210] sm:$0xff] }
  0x2a   :  { %1089 = vmatprep.subr.mxu1 %v163_v13  ;;  %1055 = vmatpush3.msra.mxu0 %v115_v14  ;;  %v136_v59 = vld [vmem:[%s2229_s1 + $0x310] sm:$0xff]  ;;  %v119_v60 = vld [vmem:[%s2229_s1 + $0x288] sm:$0xff]  ;;  %v118_v0 = vld [vmem:[%s2229_s1 + $0x280] sm:$0xff] }
  0x2b   :  { %1090 = vmatpush3.msra.mxu1 %v147_v15  ;;  %1056 = vmatprep.subr.mxu0 %v130_v16  ;;  %v151_v61 = vld [vmem:[%s2229_s1 + $0x388] sm:$0xff]  ;;  %v150_v1 = vld [vmem:[%s2229_s1 + $0x380] sm:$0xff]  ;;  %v29_v6 = vld [vmem:[%s2230_s0 + $0x38] sm:$0xff] }
  0x2c   :  { %1091 = vmatprep.subr.mxu1 %v162_v17  ;;  %1057 = vmatpush3.msra.mxu0 %v114_v18  ;;  %v103_v62 = vld [vmem:[%s2229_s1 + $0x208] sm:$0xff]  ;;  %v102_v2 = vld [vmem:[%s2229_s1 + $0x200] sm:$0xff]  ;;  %v197_v7 = vld [vmem:[%s2229_s1 + $0x4f8] sm:$0xff] }
  0x2d   :  { %1092 = vmatpush3.msra.mxu1 %v146_v19  ;;  %1058 = vmatprep.subr.mxu0 %v129_v20  ;;  %v135_v63 = vld [vmem:[%s2229_s1 + $0x308] sm:$0xff]  ;;  %v134_v4 = vld [vmem:[%s2229_s1 + $0x300] sm:$0xff]  ;;  %v229_v8 = vld [vmem:[%s2229_s1 + $0x5f8] sm:$0xff] }
  0x2e   :  { %1093 = vmatprep.subr.mxu1 %v161_v21  ;;  %1059 = vmatpush3.msra.mxu0 %v113_v22  ;;  %v27_v3 = vld [vmem:[%s2230_s0 + $0x28] sm:$0xff]  ;;  %v26_v5 = vld [vmem:[%s2230_s0 + $0x20] sm:$0xff]  ;;  %v28_v9 = vld [vmem:[%s2230_s0 + $0x30] sm:$0xff] }
  0x2f   :  { %1094 = vmatpush3.msra.mxu1 %v145_v23  ;;  %1060 = vmatprep.subr.mxu0 %v128_v24  ;;  %v181_v10 = vld [vmem:[%s2229_s1 + $0x478] sm:$0xff]  ;;  %v196_v12 = vld [vmem:[%s2229_s1 + $0x4f0] sm:$0xff]  ;;  %v195_v16 = vld [vmem:[%s2229_s1 + $0x4e8] sm:$0xff] }
  0x30   :  { %1095 = vmatprep.subr.mxu1 %v160_v25  ;;  %1061 = vmatpush3.msra.mxu0 %v112_v26  ;;  %v213_v11 = vld [vmem:[%s2229_s1 + $0x578] sm:$0xff]  ;;  %v228_v13 = vld [vmem:[%s2229_s1 + $0x5f0] sm:$0xff]  ;;  %v227_v17 = vld [vmem:[%s2229_s1 + $0x5e8] sm:$0xff] }
  0x31   :  { %1096 = vmatpush3.msra.mxu1 %v144_v27  ;;  %1062 = vmatprep.subr.mxu0 %v127_v28  ;;  %v180_v14 = vld [vmem:[%s2229_s1 + $0x470] sm:$0xff]  ;;  %v179_v18 = vld [vmem:[%s2229_s1 + $0x468] sm:$0xff]  ;;  %v194_v20 = vld [vmem:[%s2229_s1 + $0x4e0] sm:$0xff] }
  0x32   :  { %1097 = vmatprep.subr.mxu1 %v159_v29  ;;  %1063 = vmatpush3.msra.mxu0 %v111_v30  ;;  %v212_v15 = vld [vmem:[%s2229_s1 + $0x570] sm:$0xff]  ;;  %v211_v19 = vld [vmem:[%s2229_s1 + $0x568] sm:$0xff]  ;;  %v226_v21 = vld [vmem:[%s2229_s1 + $0x5e0] sm:$0xff] }
  0x33   :  { %1098 = vmatpush3.msra.mxu1 %v143_v31  ;;  %1064 = vmatprep.subr.mxu0 %v126_v32  ;;  %v178_v22 = vld [vmem:[%s2229_s1 + $0x460] sm:$0xff]  ;;  %v193_v24 = vld [vmem:[%s2229_s1 + $0x4d8] sm:$0xff]  ;;  %v192_v28 = vld [vmem:[%s2229_s1 + $0x4d0] sm:$0xff] }
  0x34   :  { %1099 = vmatprep.subr.mxu1 %v158_v33  ;;  %1065 = vmatpush3.msra.mxu0 %v110_v34  ;;  %v210_v23 = vld [vmem:[%s2229_s1 + $0x560] sm:$0xff]  ;;  %v225_v25 = vld [vmem:[%s2229_s1 + $0x5d8] sm:$0xff]  ;;  %v224_v29 = vld [vmem:[%s2229_s1 + $0x5d0] sm:$0xff] }
  0x35   :  { %1100 = vmatpush3.msra.mxu1 %v142_v35  ;;  %1066 = vmatprep.subr.mxu0 %v125_v36  ;;  %v177_v26 = vld [vmem:[%s2229_s1 + $0x458] sm:$0xff]  ;;  %v176_v30 = vld [vmem:[%s2229_s1 + $0x450] sm:$0xff]  ;;  %v191_v32 = vld [vmem:[%s2229_s1 + $0x4c8] sm:$0xff] }
  0x36   :  { %1101 = vmatprep.subr.mxu1 %v157_v37  ;;  %1067 = vmatpush3.msra.mxu0 %v109_v38  ;;  %v209_v27 = vld [vmem:[%s2229_s1 + $0x558] sm:$0xff]  ;;  %v208_v31 = vld [vmem:[%s2229_s1 + $0x550] sm:$0xff]  ;;  %v223_v33 = vld [vmem:[%s2229_s1 + $0x5c8] sm:$0xff] }
  0x37   :  { %1102 = vmatpush3.msra.mxu1 %v141_v39  ;;  %1068 = vmatprep.subr.mxu0 %v124_v40  ;;  %v175_v34 = vld [vmem:[%s2229_s1 + $0x448] sm:$0xff]  ;;  %v190_v36 = vld [vmem:[%s2229_s1 + $0x4c0] sm:$0xff]  ;;  %v189_v40 = vld [vmem:[%s2229_s1 + $0x4b8] sm:$0xff] }
  0x38   :  { %1103 = vmatprep.subr.mxu1 %v156_v41  ;;  %1069 = vmatpush3.msra.mxu0 %v108_v42  ;;  %v207_v35 = vld [vmem:[%s2229_s1 + $0x548] sm:$0xff]  ;;  %v222_v37 = vld [vmem:[%s2229_s1 + $0x5c0] sm:$0xff]  ;;  %v221_v41 = vld [vmem:[%s2229_s1 + $0x5b8] sm:$0xff] }
  0x39   :  { %1104 = vmatpush3.msra.mxu1 %v140_v43  ;;  %1070 = vmatprep.subr.mxu0 %v123_v44  ;;  %v174_v38 = vld [vmem:[%s2229_s1 + $0x440] sm:$0xff]  ;;  %v173_v42 = vld [vmem:[%s2229_s1 + $0x438] sm:$0xff]  ;;  %v188_v44 = vld [vmem:[%s2229_s1 + $0x4b0] sm:$0xff] }
  0x3a   :  { %1105 = vmatprep.subr.mxu1 %v155_v45  ;;  %1071 = vmatpush3.msra.mxu0 %v107_v46  ;;  %v206_v39 = vld [vmem:[%s2229_s1 + $0x540] sm:$0xff]  ;;  %v205_v43 = vld [vmem:[%s2229_s1 + $0x538] sm:$0xff]  ;;  %v220_v45 = vld [vmem:[%s2229_s1 + $0x5b0] sm:$0xff] }
  0x3b   :  { %1106 = vmatpush3.msra.mxu1 %v139_v47  ;;  %1072 = vmatprep.subr.mxu0 %v122_v48  ;;  %v172_v46 = vld [vmem:[%s2229_s1 + $0x430] sm:$0xff]  ;;  %v187_v48 = vld [vmem:[%s2229_s1 + $0x4a8] sm:$0xff] }
  0x3c   :  { %1107 = vmatprep.subr.mxu1 %v154_v49  ;;  %1073 = vmatpush3.msra.mxu0 %v106_v50  ;;  %v204_v47 = vld [vmem:[%s2229_s1 + $0x530] sm:$0xff]  ;;  %v219_v49 = vld [vmem:[%s2229_s1 + $0x5a8] sm:$0xff] }
  0x3d   :  { %1108 = vmatpush3.msra.mxu1 %v138_v51  ;;  %1074 = vmatprep.subr.mxu0 %v121_v52  ;;  %v171_v50 = vld [vmem:[%s2229_s1 + $0x428] sm:$0xff]  ;;  %v186_v52 = vld [vmem:[%s2229_s1 + $0x4a0] sm:$0xff] }
  0x3e   :  { %1109 = vmatprep.subr.mxu1 %v153_v53  ;;  %1075 = vmatpush3.msra.mxu0 %v105_v54  ;;  %v203_v51 = vld [vmem:[%s2229_s1 + $0x528] sm:$0xff]  ;;  %v218_v53 = vld [vmem:[%s2229_s1 + $0x5a0] sm:$0xff] }
  0x3f   :  { %1110 = vmatpush3.msra.mxu1 %v137_v55  ;;  %1076 = vmatprep.subr.mxu0 %v120_v56  ;;  %v170_v54 = vld [vmem:[%s2229_s1 + $0x420] sm:$0xff]  ;;  %v185_v56 = vld [vmem:[%s2229_s1 + $0x498] sm:$0xff] }
  0x40   :  { %1111 = vmatprep.subr.mxu1 %v152_v57  ;;  %1077 = vmatpush3.msra.mxu0 %v104_v58  ;;  %v202_v55 = vld [vmem:[%s2229_s1 + $0x520] sm:$0xff]  ;;  %v217_v57 = vld [vmem:[%s2229_s1 + $0x598] sm:$0xff] }
  0x41   :  { %1112 = vmatpush3.msra.mxu1 %v136_v59  ;;  %1078 = vmatprep.subr.mxu0 %v119_v60  ;;  %v169_v58 = vld [vmem:[%s2229_s1 + $0x418] sm:$0xff]  ;;  %v184_v60 = vld [vmem:[%s2229_s1 + $0x490] sm:$0xff] }
  0x42   :  { %1113 = vmatprep.subr.mxu1 %v151_v61  ;;  %1079 = vmatpush3.msra.mxu0 %v103_v62  ;;  %v201_v59 = vld [vmem:[%s2229_s1 + $0x518] sm:$0xff]  ;;  %v216_v61 = vld [vmem:[%s2229_s1 + $0x590] sm:$0xff] }
  0x43   :  { %1114 = vmatpush3.msra.mxu1 %v135_v63  ;;  %1080 = vmatprep.subr.mxu0 %v118_v0  ;;  %v168_v62 = vld [vmem:[%s2229_s1 + $0x410] sm:$0xff]  ;;  %v183_v0 = vld [vmem:[%s2229_s1 + $0x488] sm:$0xff] }
  0x44   :  { %1115 = vmatprep.subr.mxu1 %v150_v1  ;;  %1081 = vmatpush3.msra.mxu0 %v102_v2  ;;  %v200_v63 = vld [vmem:[%s2229_s1 + $0x510] sm:$0xff]  ;;  %v215_v1 = vld [vmem:[%s2229_s1 + $0x588] sm:$0xff] }
  0x45   :  { %505 = vmatprep.mubr.f32.mxu0 %v27_v3  ;;  %1116 = vmatpush3.msra.mxu1 %v134_v4  ;;  %v167_v2 = vld [vmem:[%s2229_s1 + $0x408] sm:$0xff]  ;;  %v182_v4 = vld [vmem:[%s2229_s1 + $0x480] sm:$0xff] }
  0x46   :  { %506 = vmatmul.mubr.f32.vlgmr.msra.gmra.mxu0 %v26_v5  ;;  %575 = vmatprep.mubr.f32.mxu1 %v29_v6  ;;  %v199_v3 = vld [vmem:[%s2229_s1 + $0x508] sm:$0xff]  ;;  %v214_v5 = vld [vmem:[%s2229_s1 + $0x580] sm:$0xff] }
  0x47   :  { %1120 = vmatprep.subr.mxu0 %v197_v7  ;;  %1155 = vmatprep.subr.mxu1 %v229_v8  ;;  %v166_v6 = vld [vmem:[%s2229_s1 + $0x400] sm:$0xff]  ;;  %v31_v7 = vld [vmem:[%s2230_s0 + $0x48] sm:$0xff] }
  0x48   :  { %576 = vmatmul.mubr.f32.vlgmr.msra.gmra.mxu1 %v28_v9  ;;  %1121 = vmatpush3.msra.mxu0 %v181_v10  ;;  %v198_v8 = vld [vmem:[%s2229_s1 + $0x500] sm:$0xff]  ;;  %v33_v10 = vld [vmem:[%s2230_s0 + $0x58] sm:$0xff] }
  0x49   :  { %1156 = vmatpush3.msra.mxu1 %v213_v11  ;;  %1122 = vmatprep.subr.mxu0 %v196_v12  ;;  %v30_v9 = vld [vmem:[%s2230_s0 + $0x40] sm:$0xff]  ;;  %v261_v11 = vld [vmem:[%s2229_s1 + $0x6f8] sm:$0xff] }
  0x4a   :  { %1157 = vmatprep.subr.mxu1 %v228_v13  ;;  %1123 = vmatpush3.msra.mxu0 %v180_v14  ;;  %v293_v12 = vld [vmem:[%s2229_s1 + $0x7f8] sm:$0xff]  ;;  %v32_v13 = vld [vmem:[%s2230_s0 + $0x50] sm:$0xff] }
  0x4b   :  { %1158 = vmatpush3.msra.mxu1 %v212_v15  ;;  %1124 = vmatprep.subr.mxu0 %v195_v16  ;;  %v245_v14 = vld [vmem:[%s2229_s1 + $0x678] sm:$0xff]  ;;  %v260_v16 = vld [vmem:[%s2229_s1 + $0x6f0] sm:$0xff] }
  0x4c   :  { %1159 = vmatprep.subr.mxu1 %v227_v17  ;;  %1125 = vmatpush3.msra.mxu0 %v179_v18  ;;  %v277_v15 = vld [vmem:[%s2229_s1 + $0x778] sm:$0xff]  ;;  %v292_v17 = vld [vmem:[%s2229_s1 + $0x7f0] sm:$0xff] }
  0x4d   :  { %1160 = vmatpush3.msra.mxu1 %v211_v19  ;;  %1126 = vmatprep.subr.mxu0 %v194_v20  ;;  %v244_v18 = vld [vmem:[%s2229_s1 + $0x670] sm:$0xff]  ;;  %v259_v20 = vld [vmem:[%s2229_s1 + $0x6e8] sm:$0xff] }
  0x4e   :  { %1161 = vmatprep.subr.mxu1 %v226_v21  ;;  %1127 = vmatpush3.msra.mxu0 %v178_v22  ;;  %v276_v19 = vld [vmem:[%s2229_s1 + $0x770] sm:$0xff]  ;;  %v291_v21 = vld [vmem:[%s2229_s1 + $0x7e8] sm:$0xff] }
  0x4f   :  { %1162 = vmatpush3.msra.mxu1 %v210_v23  ;;  %1128 = vmatprep.subr.mxu0 %v193_v24  ;;  %v243_v22 = vld [vmem:[%s2229_s1 + $0x668] sm:$0xff]  ;;  %v258_v24 = vld [vmem:[%s2229_s1 + $0x6e0] sm:$0xff] }
  0x50   :  { %1163 = vmatprep.subr.mxu1 %v225_v25  ;;  %1129 = vmatpush3.msra.mxu0 %v177_v26  ;;  %v275_v23 = vld [vmem:[%s2229_s1 + $0x768] sm:$0xff]  ;;  %v290_v25 = vld [vmem:[%s2229_s1 + $0x7e0] sm:$0xff] }
  0x51   :  { %1164 = vmatpush3.msra.mxu1 %v209_v27  ;;  %1130 = vmatprep.subr.mxu0 %v192_v28  ;;  %v242_v26 = vld [vmem:[%s2229_s1 + $0x660] sm:$0xff]  ;;  %v257_v28 = vld [vmem:[%s2229_s1 + $0x6d8] sm:$0xff] }
  0x52   :  { %1165 = vmatprep.subr.mxu1 %v224_v29  ;;  %1131 = vmatpush3.msra.mxu0 %v176_v30  ;;  %v274_v27 = vld [vmem:[%s2229_s1 + $0x760] sm:$0xff]  ;;  %v289_v29 = vld [vmem:[%s2229_s1 + $0x7d8] sm:$0xff] }
  0x53   :  { %1166 = vmatpush3.msra.mxu1 %v208_v31  ;;  %1132 = vmatprep.subr.mxu0 %v191_v32  ;;  %v241_v30 = vld [vmem:[%s2229_s1 + $0x658] sm:$0xff]  ;;  %v256_v32 = vld [vmem:[%s2229_s1 + $0x6d0] sm:$0xff] }
  0x54   :  { %1167 = vmatprep.subr.mxu1 %v223_v33  ;;  %1133 = vmatpush3.msra.mxu0 %v175_v34  ;;  %v273_v31 = vld [vmem:[%s2229_s1 + $0x758] sm:$0xff]  ;;  %v288_v33 = vld [vmem:[%s2229_s1 + $0x7d0] sm:$0xff] }
  0x55   :  { %1168 = vmatpush3.msra.mxu1 %v207_v35  ;;  %1134 = vmatprep.subr.mxu0 %v190_v36  ;;  %v240_v34 = vld [vmem:[%s2229_s1 + $0x650] sm:$0xff]  ;;  %v255_v36 = vld [vmem:[%s2229_s1 + $0x6c8] sm:$0xff] }
  0x56   :  { %1169 = vmatprep.subr.mxu1 %v222_v37  ;;  %1135 = vmatpush3.msra.mxu0 %v174_v38  ;;  %v272_v35 = vld [vmem:[%s2229_s1 + $0x750] sm:$0xff]  ;;  %v287_v37 = vld [vmem:[%s2229_s1 + $0x7c8] sm:$0xff] }
  0x57   :  { %1170 = vmatpush3.msra.mxu1 %v206_v39  ;;  %1136 = vmatprep.subr.mxu0 %v189_v40  ;;  %v239_v38 = vld [vmem:[%s2229_s1 + $0x648] sm:$0xff]  ;;  %v254_v40 = vld [vmem:[%s2229_s1 + $0x6c0] sm:$0xff] }
  0x58   :  { %1171 = vmatprep.subr.mxu1 %v221_v41  ;;  %1137 = vmatpush3.msra.mxu0 %v173_v42  ;;  %v271_v39 = vld [vmem:[%s2229_s1 + $0x748] sm:$0xff]  ;;  %v286_v41 = vld [vmem:[%s2229_s1 + $0x7c0] sm:$0xff] }
  0x59   :  { %1172 = vmatpush3.msra.mxu1 %v205_v43  ;;  %1138 = vmatprep.subr.mxu0 %v188_v44  ;;  %v238_v42 = vld [vmem:[%s2229_s1 + $0x640] sm:$0xff]  ;;  %v253_v44 = vld [vmem:[%s2229_s1 + $0x6b8] sm:$0xff] }
  0x5a   :  { %1173 = vmatprep.subr.mxu1 %v220_v45  ;;  %1139 = vmatpush3.msra.mxu0 %v172_v46  ;;  %v270_v43 = vld [vmem:[%s2229_s1 + $0x740] sm:$0xff]  ;;  %v285_v45 = vld [vmem:[%s2229_s1 + $0x7b8] sm:$0xff] }
  0x5b   :  { %1174 = vmatpush3.msra.mxu1 %v204_v47  ;;  %1140 = vmatprep.subr.mxu0 %v187_v48  ;;  %v237_v46 = vld [vmem:[%s2229_s1 + $0x638] sm:$0xff]  ;;  %v252_v48 = vld [vmem:[%s2229_s1 + $0x6b0] sm:$0xff] }
  0x5c   :  { %1175 = vmatprep.subr.mxu1 %v219_v49  ;;  %1141 = vmatpush3.msra.mxu0 %v171_v50  ;;  %v269_v47 = vld [vmem:[%s2229_s1 + $0x738] sm:$0xff]  ;;  %v284_v49 = vld [vmem:[%s2229_s1 + $0x7b0] sm:$0xff] }
  0x5d   :  { %1176 = vmatpush3.msra.mxu1 %v203_v51  ;;  %1142 = vmatprep.subr.mxu0 %v186_v52  ;;  %v236_v50 = vld [vmem:[%s2229_s1 + $0x630] sm:$0xff]  ;;  %v251_v52 = vld [vmem:[%s2229_s1 + $0x6a8] sm:$0xff] }
  0x5e   :  { %1177 = vmatprep.subr.mxu1 %v218_v53  ;;  %1143 = vmatpush3.msra.mxu0 %v170_v54  ;;  %v268_v51 = vld [vmem:[%s2229_s1 + $0x730] sm:$0xff]  ;;  %v283_v53 = vld [vmem:[%s2229_s1 + $0x7a8] sm:$0xff] }
  0x5f   :  { %1178 = vmatpush3.msra.mxu1 %v202_v55  ;;  %1144 = vmatprep.subr.mxu0 %v185_v56  ;;  %v235_v54 = vld [vmem:[%s2229_s1 + $0x628] sm:$0xff]  ;;  %v250_v56 = vld [vmem:[%s2229_s1 + $0x6a0] sm:$0xff] }
  0x60   :  { %1179 = vmatprep.subr.mxu1 %v217_v57  ;;  %1145 = vmatpush3.msra.mxu0 %v169_v58  ;;  %v267_v55 = vld [vmem:[%s2229_s1 + $0x728] sm:$0xff]  ;;  %v282_v57 = vld [vmem:[%s2229_s1 + $0x7a0] sm:$0xff] }
  0x61   :  { %1180 = vmatpush3.msra.mxu1 %v201_v59  ;;  %1146 = vmatprep.subr.mxu0 %v184_v60  ;;  %v234_v58 = vld [vmem:[%s2229_s1 + $0x620] sm:$0xff]  ;;  %v249_v60 = vld [vmem:[%s2229_s1 + $0x698] sm:$0xff] }
  0x62   :  { %1181 = vmatprep.subr.mxu1 %v216_v61  ;;  %1147 = vmatpush3.msra.mxu0 %v168_v62  ;;  %v266_v59 = vld [vmem:[%s2229_s1 + $0x720] sm:$0xff]  ;;  %v281_v61 = vld [vmem:[%s2229_s1 + $0x798] sm:$0xff] }
  0x63   :  { %1182 = vmatpush3.msra.mxu1 %v200_v63  ;;  %1148 = vmatprep.subr.mxu0 %v183_v0  ;;  %v233_v62 = vld [vmem:[%s2229_s1 + $0x618] sm:$0xff]  ;;  %v248_v0 = vld [vmem:[%s2229_s1 + $0x690] sm:$0xff] }
  0x64   :  { %1183 = vmatprep.subr.mxu1 %v215_v1  ;;  %1149 = vmatpush3.msra.mxu0 %v167_v2  ;;  %v265_v63 = vld [vmem:[%s2229_s1 + $0x718] sm:$0xff]  ;;  %v280_v1 = vld [vmem:[%s2229_s1 + $0x790] sm:$0xff] }
  0x65   :  { %1184 = vmatpush3.msra.mxu1 %v199_v3  ;;  %1150 = vmatprep.subr.mxu0 %v182_v4  ;;  %v232_v2 = vld [vmem:[%s2229_s1 + $0x610] sm:$0xff]  ;;  %v247_v4 = vld [vmem:[%s2229_s1 + $0x688] sm:$0xff] }
  0x66   :  { %1185 = vmatprep.subr.mxu1 %v214_v5  ;;  %1151 = vmatpush3.msra.mxu0 %v166_v6  ;;  %v264_v3 = vld [vmem:[%s2229_s1 + $0x710] sm:$0xff]  ;;  %v279_v5 = vld [vmem:[%s2229_s1 + $0x788] sm:$0xff] }
  0x67   :  { %645 = vmatprep.mubr.f32.mxu0 %v31_v7  ;;  %1186 = vmatpush3.msra.mxu1 %v198_v8  ;;  %v231_v6 = vld [vmem:[%s2229_s1 + $0x608] sm:$0xff]  ;;  %v246_v8 = vld [vmem:[%s2229_s1 + $0x680] sm:$0xff] }
  0x68   :  { %646 = vmatmul.mubr.f32.vlgmr.msra.gmra.mxu0 %v30_v9  ;;  %715 = vmatprep.mubr.f32.mxu1 %v33_v10  ;;  %v263_v7 = vld [vmem:[%s2229_s1 + $0x708] sm:$0xff]  ;;  %v278_v9 = vld [vmem:[%s2229_s1 + $0x780] sm:$0xff] }
  0x69   :  { %1190 = vmatprep.subr.mxu0 %v261_v11  ;;  %1225 = vmatprep.subr.mxu1 %v293_v12  ;;  %v230_v10 = vld [vmem:[%s2229_s1 + $0x600] sm:$0xff]  ;;  %v35_v11 = vld [vmem:[%s2230_s0 + $0x68] sm:$0xff] }
  0x6a   :  { %716 = vmatmul.mubr.f32.vlgmr.msra.gmra.mxu1 %v32_v13  ;;  %1191 = vmatpush3.msra.mxu0 %v245_v14  ;;  %v262_v12 = vld [vmem:[%s2229_s1 + $0x700] sm:$0xff]  ;;  %v37_v13 = vld [vmem:[%s2230_s0 + $0x78] sm:$0xff] }
  0x6b   :  { %1226 = vmatpush3.msra.mxu1 %v277_v15  ;;  %1192 = vmatprep.subr.mxu0 %v260_v16  ;;  %v34_v14 = vld [vmem:[%s2230_s0 + $0x60] sm:$0xff]  ;;  %v36_v15 = vld [vmem:[%s2230_s0 + $0x70] sm:$0xff]  ;;  %v1316_v16 = vmov 0.0  }
  0x6c   :  { %1227 = vmatprep.subr.mxu1 %v292_v17  ;;  %1193 = vmatpush3.msra.mxu0 %v244_v18  ;;  %v880_v17 = vld [vmem:[%s2231_s3 + $0x78] sm:$0xff]  ;;  %v879_v18 = vld [vmem:[%s2231_s3 + $0x70] sm:$0xff] }
  0x6d   :  { %1228 = vmatpush3.msra.mxu1 %v276_v19  ;;  %1194 = vmatprep.subr.mxu0 %v259_v20  ;;  %v878_v19 = vld [vmem:[%s2231_s3 + $0x68] sm:$0xff]  ;;  %v877_v20 = vld [vmem:[%s2231_s3 + $0x60] sm:$0xff] }
  0x6e   :  { %1229 = vmatprep.subr.mxu1 %v291_v21  ;;  %1195 = vmatpush3.msra.mxu0 %v243_v22  ;;  %v876_v21 = vld [vmem:[%s2231_s3 + $0x58] sm:$0xff]  ;;  %v875_v22 = vld [vmem:[%s2231_s3 + $0x50] sm:$0xff] }
  0x6f   :  { %1230 = vmatpush3.msra.mxu1 %v275_v23  ;;  %1196 = vmatprep.subr.mxu0 %v258_v24  ;;  %v874_v23 = vld [vmem:[%s2231_s3 + $0x48] sm:$0xff]  ;;  %v873_v24 = vld [vmem:[%s2231_s3 + $0x40] sm:$0xff] }
  0x70   :  { %1231 = vmatprep.subr.mxu1 %v290_v25  ;;  %1197 = vmatpush3.msra.mxu0 %v242_v26  ;;  %v872_v25 = vld [vmem:[%s2231_s3 + $0x38] sm:$0xff]  ;;  %v871_v26 = vld [vmem:[%s2231_s3 + $0x30] sm:$0xff] }
  0x71   :  { %1232 = vmatpush3.msra.mxu1 %v274_v27  ;;  %1198 = vmatprep.subr.mxu0 %v257_v28  ;;  %v870_v27 = vld [vmem:[%s2231_s3 + $0x28] sm:$0xff]  ;;  %v869_v28 = vld [vmem:[%s2231_s3 + $0x20] sm:$0xff] }
  0x72   :  { %1233 = vmatprep.subr.mxu1 %v289_v29  ;;  %1199 = vmatpush3.msra.mxu0 %v241_v30  ;;  %v868_v29 = vld [vmem:[%s2231_s3 + $0x18] sm:$0xff]  ;;  %v867_v30 = vld [vmem:[%s2231_s3 + $0x10] sm:$0xff] }
  0x73   :  { %1234 = vmatpush3.msra.mxu1 %v273_v31  ;;  %1200 = vmatprep.subr.mxu0 %v256_v32  ;;  %v866_v31 = vld [vmem:[%s2231_s3 + $0x8] sm:$0xff]  ;;  %v865_v32 = vld [vmem:[%s2231_s3] sm:$0xff] }
  0x74   :  { %1235 = vmatprep.subr.mxu1 %v288_v33  ;;  %1201 = vmatpush3.msra.mxu0 %v240_v34 }
  0x75   :  { %1236 = vmatpush3.msra.mxu1 %v272_v35  ;;  %1202 = vmatprep.subr.mxu0 %v255_v36 }
  0x76   :  { %1237 = vmatprep.subr.mxu1 %v287_v37  ;;  %1203 = vmatpush3.msra.mxu0 %v239_v38  ;;  %v978_v38 = vld [vmem:[%s2232_s2] ss:$0 sm:$0xff] }
  0x77   :  { %1238 = vmatpush3.msra.mxu1 %v271_v39  ;;  %1204 = vmatprep.subr.mxu0 %v254_v40 }
  0x78   :  { %1239 = vmatprep.subr.mxu1 %v286_v41  ;;  %1205 = vmatpush3.msra.mxu0 %v238_v42 }
  0x79   :  { %1240 = vmatpush3.msra.mxu1 %v270_v43  ;;  %1206 = vmatprep.subr.mxu0 %v253_v44 }
  0x7a   :  { %1241 = vmatprep.subr.mxu1 %v285_v45  ;;  %1207 = vmatpush3.msra.mxu0 %v237_v46 }
  0x7b   :  { %1242 = vmatpush3.msra.mxu1 %v269_v47  ;;  %1208 = vmatprep.subr.mxu0 %v252_v48 }
  0x7c   :  { %1243 = vmatprep.subr.mxu1 %v284_v49  ;;  %1209 = vmatpush3.msra.mxu0 %v236_v50 }
  0x7d   :  { %1244 = vmatpush3.msra.mxu1 %v268_v51  ;;  %1210 = vmatprep.subr.mxu0 %v251_v52 }
  0x7e   :  { %1245 = vmatprep.subr.mxu1 %v283_v53  ;;  %1211 = vmatpush3.msra.mxu0 %v235_v54 }
  0x7f   :  { %1246 = vmatpush3.msra.mxu1 %v267_v55  ;;  %1212 = vmatprep.subr.mxu0 %v250_v56 }
  0x80   :  { %1247 = vmatprep.subr.mxu1 %v282_v57  ;;  %1213 = vmatpush3.msra.mxu0 %v234_v58 }
  0x81   :  { %1248 = vmatpush3.msra.mxu1 %v266_v59  ;;  %1214 = vmatprep.subr.mxu0 %v249_v60 }
  0x82   :  { %1249 = vmatprep.subr.mxu1 %v281_v61  ;;  %1215 = vmatpush3.msra.mxu0 %v233_v62 }
  0x83   :  { %1250 = vmatpush3.msra.mxu1 %v265_v63  ;;  %1216 = vmatprep.subr.mxu0 %v248_v0 }
  0x84   :  { %1251 = vmatprep.subr.mxu1 %v280_v1  ;;  %1217 = vmatpush3.msra.mxu0 %v232_v2 }
  0x85   :  { %1252 = vmatpush3.msra.mxu1 %v264_v3  ;;  %1218 = vmatprep.subr.mxu0 %v247_v4  ;;  %v979_v4 = vld [vmem:[%s2234_s4] ss:$0 sm:$0xff] }
  0x86   :  { %1253 = vmatprep.subr.mxu1 %v279_v5  ;;  %1219 = vmatpush3.msra.mxu0 %v231_v6 }
  0x87   :  { %1254 = vmatpush3.msra.mxu1 %v263_v7  ;;  %1220 = vmatprep.subr.mxu0 %v246_v8 }
  0x88   :  { %1255 = vmatprep.subr.mxu1 %v278_v9  ;;  %1221 = vmatpush3.msra.mxu0 %v230_v10 }
  0x89   :  { %785 = vmatprep.mubr.f32.mxu0 %v35_v11  ;;  %1256 = vmatpush3.msra.mxu1 %v262_v12 }
  0x8a   :  { %855 = vmatprep.mubr.f32.mxu1 %v37_v13  ;;  %786 = vmatmul.mubr.f32.vlgmr.msra.gmra.mxu0 %v34_v14 }
  0x8b   :  { %856 = vmatmul.mubr.f32.vlgmr.msra.gmra.mxu1 %v36_v15  ;;  %1277 = vmatprep.subr.mxu0 %v1316_v16 }
  0x8c   :  { %1278 = vmatpush3.msra.mxu0 %v880_v17  ;;  %1309 = vmatprep.mubr.msk.f32.mxu0 %vm1317_vm0, %v1316_v16 }
  0x8d   :  { %1279 = vmatprep.subr.mxu0 %v1316_v16 }
  0x8e   :  { %1280 = vmatpush3.msra.mxu0 %v879_v18 }
  0x8f   :  { %1281 = vmatprep.subr.mxu0 %v1316_v16 }
  0x90   :  { %1282 = vmatpush3.msra.mxu0 %v878_v19 }
  0x91   :  { %1283 = vmatprep.subr.mxu0 %v1316_v16 }
  0x92   :  { %1284 = vmatpush3.msra.mxu0 %v877_v20 }
  0x93   :  { %1285 = vmatprep.subr.mxu0 %v1316_v16 }
  0x94   :  { %1286 = vmatpush3.msra.mxu0 %v876_v21 }
  0x95   :  { %1287 = vmatprep.subr.mxu0 %v1316_v16 }
  0x96   :  { %1288 = vmatpush3.msra.mxu0 %v875_v22 }
  0x97   :  { %1289 = vmatprep.subr.mxu0 %v1316_v16 }
  0x98   :  { %1290 = vmatpush3.msra.mxu0 %v874_v23 }
  0x99   :  { %1291 = vmatprep.subr.mxu0 %v1316_v16 }
  0x9a   :  { %1292 = vmatpush3.msra.mxu0 %v873_v24 }
  0x9b   :  { %1293 = vmatprep.subr.mxu0 %v1316_v16 }
  0x9c   :  { %1294 = vmatpush3.msra.mxu0 %v872_v25 }
  0x9d   :  { %1295 = vmatprep.subr.mxu0 %v1316_v16 }
  0x9e   :  { %1296 = vmatpush3.msra.mxu0 %v871_v26 }
  0x9f   :  { %1297 = vmatprep.subr.mxu0 %v1316_v16 }
  0xa0   :  { %1298 = vmatpush3.msra.mxu0 %v870_v27 }
  0xa1   :  { %1299 = vmatprep.subr.mxu0 %v1316_v16 }
  0xa2   :  { %1300 = vmatpush3.msra.mxu0 %v869_v28 }
  0xa3   :  { %1301 = vmatprep.subr.mxu0 %v1316_v16 }
  0xa4   :  { %1302 = vmatpush3.msra.mxu0 %v868_v29 }
  0xa5   :  { %1303 = vmatprep.subr.mxu0 %v1316_v16 }
  0xa6   :  { %1304 = vmatpush3.msra.mxu0 %v867_v30 }
  0xa7   :  { %1305 = vmatprep.subr.mxu0 %v1316_v16 }
  0xa8   :  { %1306 = vmatpush3.msra.mxu0 %v866_v31 }
  0xa9   :  { %1307 = vmatprep.subr.mxu0 %v1316_v16 }
  0xaa   :  { %1308 = vmatpush3.msra.mxu0 %v865_v32 }
  0xe4   :  { %v1012_v33 = vpop.f32.mrf.mxu0 }
  0xe6   :  { %v1047_v34 = vpop.f32.mrf.mxu1  ;;  %v1013_v35 = vpop.f32.mrf.mxu0 }
  0xe7   :  { %v1014_v37 = vadd.f32 %v1013_v35, %v1012_v33 }
  0xe8   :  { %v1048_v39 = vpop.f32.mrf.mxu1 }
  0xe9   :  { %v368_v42 = vadd.f32 %v1014_v37, %v978_v38  ;;  %v1049_v43 = vadd.f32 %v1048_v39, %v1047_v34 }
  0xeb   :  { %v438_v47 = vadd.f32 %v1049_v43, %v368_v42 }
 0x106   :  { %v1082_v36 = vpop.f32.mrf.mxu0 }
 0x108   :  { %v1117_v40 = vpop.f32.mrf.mxu1  ;;  %v1083_v41 = vpop.f32.mrf.mxu0 }
 0x109   :  { %v1084_v45 = vadd.f32 %v1083_v41, %v1082_v36 }
 0x10a   :  { %v1118_v46 = vpop.f32.mrf.mxu1 }
 0x10b   :  { %v508_v50 = vadd.f32 %v1084_v45, %v438_v47  ;;  %v1119_v51 = vadd.f32 %v1118_v46, %v1117_v40 }
 0x10d   :  { %v578_v54 = vadd.f32 %v1119_v51, %v508_v50 }
 0x128   :  { %v1152_v44 = vpop.f32.mrf.mxu0 }
 0x12a   :  { %v1187_v48 = vpop.f32.mrf.mxu1  ;;  %v1153_v49 = vpop.f32.mrf.mxu0 }
 0x12b   :  { %v1154_v52 = vadd.f32 %v1153_v49, %v1152_v44 }
 0x12c   :  { %v1188_v53 = vpop.f32.mrf.mxu1 }
 0x12d   :  { %v648_v55 = vadd.f32 %v1154_v52, %v578_v54  ;;  %v1189_v56 = vadd.f32 %v1188_v53, %v1187_v48 }
 0x12f   :  { %v718_v61 = vadd.f32 %v1189_v56, %v648_v55 }
 0x14a   :  { %v1222_v57 = vpop.f32.mrf.mxu0 }
 0x14b   :  { %v1257_v58 = vpop.f32.mrf.mxu1 }
 0x14c   :  { %v1223_v59 = vpop.f32.mrf.mxu0 }
 0x14d   :  { %v1258_v60 = vpop.f32.mrf.mxu1  ;;  %v1224_v62 = vadd.f32 %v1223_v59, %v1222_v57 }
 0x14e   :  { %v1259_v0 = vadd.f32 %v1258_v60, %v1257_v58 }
 0x14f   :  { %v788_v63 = vadd.f32 %v1224_v62, %v718_v61 }
 0x151   :  { %v858_v1 = vadd.f32 %v1259_v0, %v788_v63 }
 0x153   :  { %861 = vst [vmem:[%s2233_s5] sm:$0xff] %v858_v1  ;;  %1310 = vmatmul.mubr.f32.vlgmr.msra.gmra.mxu0 %v858_v1  ;;  %v862_v2 = vmul.f32 %v858_v1, %v858_v1 }
 0x155   :  { %863 = vadd.xlane.f32.xlu0 %v862_v2 }
 0x1de   :  { %v864_v3 = vpop.xlane.xlu0 %863 }
 0x1df   :  { %v958_v6 = vadd.f32 %v979_v4, %v864_v3 }
 0x213   :  { %v947_v5 = vpop.f32.mrf.mxu0 }
 0x214   :  { %v959_v7 = vmul.f32 2.0, %v947_v5 }
 0x215   :  { %v1311_v8 = vpop.f32.mrf.mxu0 }
 0x216   :  { %v960_v9 = vsub.f32 %v958_v6, %v959_v7 }
 0x218   :  { %v961_v10 = vmax.f32 %v960_v9, 0.0 }
 0x21a   :  { %1314 = vrsqrt.f32 %v961_v10  ;;  %vm964_vm1 = vcmp.eq.f32.partialorder %v961_v10, inf  ;;  %v967_v13 = vand.u32 2147483648, %v961_v10  ;;  %vm966_vm2 = vcmp.eq.f32.partialorder %v961_v10, 0.0 }
 0x227   :  { %v1315_v11 = vpop.eup %1314 }
 0x228   :  { %v963_v12 = vmul.f32 %v1315_v11, %v961_v10 }
 0x22a   :  { %v965_v14 = vsel %vm964_vm1, %v961_v10, %v963_v12 }
 0x22b   :  { %v968_v15 = vsel %vm966_vm2, %v967_v13, %v965_v14 }
 0x22c   :  { %969 = vst [vmem:[%s2235_s6] sm:$0xff] %v968_v15 }

</bundles_post_ra>
